<compile_context>
chip_gen: v7x
topology: tpu7x:2x2x1
jax: 0.10.0
libtpu: 0.0.40
codegen_flags: <defaults>
</compile_context>

<pallas_src>
import math

import jax
import jax.numpy as jnp
from jax.experimental import pallas as pl
from jax.experimental.pallas import tpu as pltpu


def _mha_kernel(q_ref, k_ref, v_ref, bias_ref,
                wq_ref, wk_ref, wv_ref, wo_ref,
                o_ref, acc_ref, kc_ref, vc_ref):
    """Grid = (batch, q_tile, head). One (q_tile, head) pair per step."""
    qi = pl.program_id(1)
    h = pl.program_id(2)

    @pl.when(h == 0)
    def _():
        acc_ref[...] = jnp.zeros_like(acc_ref)

    dt = q_ref.dtype  # MXU operand dtype: bf16 stays bf16, f32 stays f32

    # Per-head K/V projections: computed once per (batch, head) at the first
    # q-tile, cached in VMEM, reused by every later q-tile of this batch.
    @pl.when(qi == 0)
    def _():
        kh_new = jnp.dot(k_ref[...], wk_ref[...],
                         preferred_element_type=jnp.float32)       # (S, d_k)
        vh_new = jnp.dot(v_ref[...], wv_ref[...],
                         preferred_element_type=jnp.float32)       # (S, d_k)
        kc_ref[h] = kh_new.astype(kc_ref.dtype)
        vc_ref[h] = vh_new.astype(vc_ref.dtype)

    # Per-head Q projection; 1/sqrt(d_k) is already folded into wq_ref on host.
    qh = jnp.dot(q_ref[...], wq_ref[...],
                 preferred_element_type=jnp.float32).astype(dt)    # (Tq, d_k)

    kh = kc_ref[h]                                                 # (S, d_k)
    vh = vc_ref[h]                                                 # (S, d_k)

    # Scores: Qh @ Kh^T (contract on d_k; no explicit transpose materialized).
    scores = jax.lax.dot_general(
        qh, kh, (((1,), (1,)), ((), ())),
        preferred_element_type=jnp.float32)                        # (Tq, S)
    scores = scores + bias_ref[...].astype(jnp.float32)            # additive mask

    # Softmax in f32; normalization deferred until after the PV matmul.
    m = jnp.max(scores, axis=-1, keepdims=True)
    e = jnp.exp(scores - m)
    denom = jnp.sum(e, axis=-1, keepdims=True)
    # EUP-seeded reciprocal; two cheap Newton steps restore full f32 accuracy.
    inv = pl.reciprocal(denom, approx=True)
    inv = inv * (2.0 - denom * inv)
    inv = inv * (2.0 - denom * inv)

    pv = jnp.dot(e.astype(dt), vh, preferred_element_type=jnp.float32)  # (Tq, d_k)
    pv = pv * inv                                                       # normalize

    # Fused output projection for this head, accumulated across heads.
    acc_ref[...] += jnp.dot(pv.astype(dt), wo_ref[...],
                            preferred_element_type=jnp.float32)

    @pl.when(h == pl.num_programs(2) - 1)
    def _():
        o_ref[...] = acc_ref[...].astype(o_ref.dtype)


def _pick_q_block(s):
    # Largest MXU-friendly q-tile that divides S (256 feeds the 2x256 MXU on
    # v6e/v7x; 128 multiples still fine for v5e's 4x128 MXU).
    for cand in (256, 128, 64, 32, 16, 8):
        if s % cand == 0:
            return cand
    return s  # small / ragged S: a single full-length tile


def multi_head_attention(q, k, v, mask, wq, wk, wv, wo, *, num_heads):
    B, S, D = q.shape
    assert D % num_heads == 0, "d_model is not divisible by h"
    H = num_heads
    d_k = D // H

    # Pre-transpose & per-head-slice the weights once on the host:
    #   (W.T)[:, h*d_k:(h+1)*d_k]   -> wqT_h[h]  with shape (D, d_k)
    #   (W_o.T)[h*d_k:(h+1)*d_k, :] -> woT_h[h]  with shape (d_k, D)
    # 1/sqrt(d_k) is folded into W_q^T so the kernel skips the score scaling.
    scale = 1.0 / math.sqrt(d_k)
    wqT_h = (wq.T * scale).reshape(D, H, d_k).transpose(1, 0, 2)
    wkT_h = wk.T.reshape(D, H, d_k).transpose(1, 0, 2)
    wvT_h = wv.T.reshape(D, H, d_k).transpose(1, 0, 2)
    woT_h = wo.T.reshape(H, d_k, D)

    # Mask -> additive bias, computed once (bf16: half the HBM bytes of int32).
    bias = jnp.where(mask == 0, -1e9, 0.0).astype(jnp.bfloat16)

    tq = _pick_q_block(S)
    grid = (B, S // tq, H)

    grid_spec = pltpu.PrefetchScalarGridSpec(
        num_scalar_prefetch=0,
        grid=grid,
        in_specs=[
            pl.BlockSpec((None, tq, D), lambda b, qi, h: (b, qi, 0)),   # q tile
            pl.BlockSpec((None, S, D), lambda b, qi, h: (b, 0, 0)),     # k (full S)
            pl.BlockSpec((None, S, D), lambda b, qi, h: (b, 0, 0)),     # v (full S)
            pl.BlockSpec((None, tq, S), lambda b, qi, h: (b, qi, 0)),   # bias tile
            pl.BlockSpec((None, D, d_k), lambda b, qi, h: (h, 0, 0)),   # WqT[h]*scale
            pl.BlockSpec((None, D, d_k), lambda b, qi, h: (h, 0, 0)),   # WkT[h]
            pl.BlockSpec((None, D, d_k), lambda b, qi, h: (h, 0, 0)),   # WvT[h]
            pl.BlockSpec((None, d_k, D), lambda b, qi, h: (h, 0, 0)),   # WoT[h]
        ],
        out_specs=pl.BlockSpec((None, tq, D), lambda b, qi, h: (b, qi, 0)),
        scratch_shapes=[
            pltpu.VMEM((tq, D), jnp.float32),   # per-tile output accumulator
            pltpu.VMEM((H, S, d_k), q.dtype),   # per-batch cached K projections
            pltpu.VMEM((H, S, d_k), q.dtype),   # per-batch cached V projections
        ],
    )

    return pl.pallas_call(
        _mha_kernel,
        out_shape=jax.ShapeDtypeStruct((B, S, D), q.dtype),
        grid_spec=grid_spec,
        compiler_params=pltpu.CompilerParams(
            # batch axis is independent (megacore-shardable); the q-tile axis
            # carries the K/V cache dependency, and the head axis accumulates
            # into the resident output tile.
            dimension_semantics=("parallel", "arbitrary", "arbitrary"),
            # explicit VMEM budget: fits v7x's 64 MiB physical VMEM and raises
            # the 16/32 MiB scoped defaults on v5e/v6e for larger tiles.
            vmem_limit_bytes=64 * 1024 * 1024,
        ),
    )(q, k, v, bias, wqT_h, wkT_h, wvT_h, woT_h)


def reference_mha(q, k, v, mask, wq, wk, wv, wo, *, num_heads):
    """Pure-JAX reference reproducing the PyTorch module exactly (eval mode)."""
    B, S, D = q.shape
    d_k = D // num_heads
    Q = q @ wq.T
    K = k @ wk.T
    V = v @ wv.T
    Q = Q.reshape(B, S, num_heads, d_k).transpose(0, 2, 1, 3)
    K = K.reshape(B, S, num_heads, d_k).transpose(0, 2, 1, 3)
    V = V.reshape(B, S, num_heads, d_k).transpose(0, 2, 1, 3)
    scores = Q @ K.transpose(0, 1, 3, 2) / math.sqrt(d_k)
    scores = jnp.where(mask[:, None, :, :] == 0, -1e9, scores)
    attn = jax.nn.softmax(scores, axis=-1)
    x = attn @ V
    x = x.transpose(0, 2, 1, 3).reshape(B, S, D)
    return x @ wo.T


if __name__ == "__main__":
    # Small deterministic config: batch=2, seq=8, d_model=32, heads=4 (d_k=8).
    B, S, D, H = 2, 8, 32, 4

    key = jax.random.PRNGKey(0)
    kq, kk, kv, kwq, kwk, kwv, kwo = jax.random.split(key, 7)

    q = jax.random.normal(kq, (B, S, D), dtype=jnp.float32)
    k = jax.random.normal(kk, (B, S, D), dtype=jnp.float32)
    v = jax.random.normal(kv, (B, S, D), dtype=jnp.float32)

    # Causal mask (0 => masked), same for every batch element.
    causal = jnp.tril(jnp.ones((S, S), dtype=jnp.int32))
    mask = jnp.broadcast_to(causal, (B, S, S))

    def init_w(rng):
        bound = 1.0 / math.sqrt(D)
        return jax.random.uniform(rng, (D, D), jnp.float32, -bound, bound)

    wq = init_w(kwq)
    wk = init_w(kwk)
    wv = init_w(kwv)
    wo = init_w(kwo)

    out = multi_head_attention(q, k, v, mask, wq, wk, wv, wo, num_heads=H)
    out = jax.block_until_ready(out)

    ref = reference_mha(q, k, v, mask, wq, wk, wv, wo, num_heads=H)
    assert out.shape == (B, S, D)
    assert jnp.allclose(out, ref, atol=1e-5, rtol=1e-5), "mismatch vs reference"

    print("KERNEL_OK")
</pallas_src>

<mosaic_0001>
module attributes {stable_mosaic.version = 11 : i64} {
  func.func @_mha_kernel(%arg0: i32, %arg1: i32, %arg2: i32, %arg3: memref<1x8x32xf32, #tpu.memory_space<vmem>>, %arg4: memref<1x8x32xf32, #tpu.memory_space<vmem>>, %arg5: memref<1x8x32xf32, #tpu.memory_space<vmem>>, %arg6: memref<1x8x8xbf16, #tpu.memory_space<vmem>>, %arg7: memref<1x32x8xf32, #tpu.memory_space<vmem>>, %arg8: memref<1x32x8xf32, #tpu.memory_space<vmem>>, %arg9: memref<1x32x8xf32, #tpu.memory_space<vmem>>, %arg10: memref<1x8x32xf32, #tpu.memory_space<vmem>>, %arg11: memref<1x8x32xf32, #tpu.memory_space<vmem>>, %arg12: memref<8x32xf32, #tpu.memory_space<vmem>>, %arg13: memref<4x8x8xf32, #tpu.memory_space<vmem>>, %arg14: memref<4x8x8xf32, #tpu.memory_space<vmem>>) attributes {dimension_semantics = [#tpu.dimension_semantics<parallel>, #tpu.dimension_semantics<arbitrary>, #tpu.dimension_semantics<arbitrary>], iteration_bounds = array<i64: 2, 1, 4>, scalar_prefetch = 0 : i64, scratch_operands = 3 : i64, tpu.core_type = #tpu.core_type<tc>, window_params = [{transform_indices = @transform_0, window_bounds = array<i64: 1, 8, 32>}, {transform_indices = @transform_1, window_bounds = array<i64: 1, 8, 32>}, {transform_indices = @transform_2, window_bounds = array<i64: 1, 8, 32>}, {transform_indices = @transform_3, window_bounds = array<i64: 1, 8, 8>}, {transform_indices = @transform_4, window_bounds = array<i64: 1, 32, 8>}, {transform_indices = @transform_5, window_bounds = array<i64: 1, 32, 8>}, {transform_indices = @transform_6, window_bounds = array<i64: 1, 32, 8>}, {transform_indices = @transform_7, window_bounds = array<i64: 1, 8, 32>}, {transform_indices = @transform_8, window_bounds = array<i64: 1, 8, 32>}]} {
    %c0_i32 = arith.constant 0 : i32
    %0 = arith.cmpi eq, %arg2, %c0_i32 : i32
    %1 = arith.extui %0 : i1 to i32
    %c0_i32_0 = arith.constant 0 : i32
    %2 = arith.cmpi ne, %1, %c0_i32_0 : i32
    scf.if %2 {
      %cst_30 = arith.constant 0.000000e+00 : f32
      %50 = vector.broadcast %cst_30 : f32 to vector<8x32xf32>
      %c0_31 = arith.constant 0 : index
      %c0_32 = arith.constant 0 : index
      %51 = vector.load %arg12[%c0_31, %c0_32] : memref<8x32xf32, #tpu.memory_space<vmem>>, vector<8x32xf32>
      tpu.vector_store %arg12[%c0_31, %c0_32], %50 {strides = array<i32>} : memref<8x32xf32, #tpu.memory_space<vmem>>, vector<8x32xf32>,
    } else {
    }
    %c0_i32_1 = arith.constant 0 : i32
    %3 = arith.cmpi eq, %arg1, %c0_i32_1 : i32
    %4 = arith.extui %3 : i1 to i32
    %c0_i32_2 = arith.constant 0 : i32
    %5 = arith.cmpi ne, %4, %c0_i32_2 : i32
    scf.if %5 {
      %c0_30 = arith.constant 0 : index
      %c0_31 = arith.constant 0 : index
      %c0_32 = arith.constant 0 : index
      %50 = vector.load %arg4[%c0_30, %c0_31, %c0_32] : memref<1x8x32xf32, #tpu.memory_space<vmem>>, vector<1x8x32xf32>
      %51 = vector.shape_cast %50 : vector<1x8x32xf32> to vector<8x32xf32>
      %c0_33 = arith.constant 0 : index
      %c0_34 = arith.constant 0 : index
      %c0_35 = arith.constant 0 : index
      %52 = vector.load %arg8[%c0_33, %c0_34, %c0_35] : memref<1x32x8xf32, #tpu.memory_space<vmem>>, vector<1x32x8xf32>
      %53 = vector.shape_cast %52 : vector<1x32x8xf32> to vector<32x8xf32>
      %cst_36 = arith.constant dense<0.000000e+00> : vector<8x8xf32>
      %54 = tpu.matmul %51, %53, %cst_36 {dimension_numbers = #tpu.dot_dimension_numbers<[1], [0], [0], [1], [0, 0, 1, 1], [], []>} : vector<8x32xf32>, vector<32x8xf32>, vector<8x8xf32> -> vector<8x8xf32>
      %c0_37 = arith.constant 0 : index
      %c0_38 = arith.constant 0 : index
      %c0_39 = arith.constant 0 : index
      %55 = vector.load %arg5[%c0_37, %c0_38, %c0_39] : memref<1x8x32xf32, #tpu.memory_space<vmem>>, vector<1x8x32xf32>
      %56 = vector.shape_cast %55 : vector<1x8x32xf32> to vector<8x32xf32>
      %c0_40 = arith.constant 0 : index
      %c0_41 = arith.constant 0 : index
      %c0_42 = arith.constant 0 : index
      %57 = vector.load %arg9[%c0_40, %c0_41, %c0_42] : memref<1x32x8xf32, #tpu.memory_space<vmem>>, vector<1x32x8xf32>
      %58 = vector.shape_cast %57 : vector<1x32x8xf32> to vector<32x8xf32>
      %cst_43 = arith.constant dense<0.000000e+00> : vector<8x8xf32>
      %59 = tpu.matmul %56, %58, %cst_43 {dimension_numbers = #tpu.dot_dimension_numbers<[1], [0], [0], [1], [0, 0, 1, 1], [], []>} : vector<8x32xf32>, vector<32x8xf32>, vector<8x8xf32> -> vector<8x8xf32>
      %60 = arith.index_cast %arg2 : i32 to index
      %c0_44 = arith.constant 0 : index
      %c0_45 = arith.constant 0 : index
      %61 = vector.load %arg13[%60, %c0_44, %c0_45] : memref<4x8x8xf32, #tpu.memory_space<vmem>>, vector<1x8x8xf32>
      %62 = vector.shape_cast %61 : vector<1x8x8xf32> to vector<8x8xf32>
      %63 = vector.shape_cast %54 : vector<8x8xf32> to vector<1x8x8xf32>
      tpu.vector_store %arg13[%60, %c0_44, %c0_45], %63 {strides = array<i32>} : memref<4x8x8xf32, #tpu.memory_space<vmem>>, vector<1x8x8xf32>,
      %64 = arith.index_cast %arg2 : i32 to index
      %c0_46 = arith.constant 0 : index
      %c0_47 = arith.constant 0 : index
      %65 = vector.load %arg14[%64, %c0_46, %c0_47] : memref<4x8x8xf32, #tpu.memory_space<vmem>>, vector<1x8x8xf32>
      %66 = vector.shape_cast %65 : vector<1x8x8xf32> to vector<8x8xf32>
      %67 = vector.shape_cast %59 : vector<8x8xf32> to vector<1x8x8xf32>
      tpu.vector_store %arg14[%64, %c0_46, %c0_47], %67 {strides = array<i32>} : memref<4x8x8xf32, #tpu.memory_space<vmem>>, vector<1x8x8xf32>,
    } else {
    }
    %c0 = arith.constant 0 : index
    %c0_3 = arith.constant 0 : index
    %c0_4 = arith.constant 0 : index
    %6 = vector.load %arg3[%c0, %c0_3, %c0_4] : memref<1x8x32xf32, #tpu.memory_space<vmem>>, vector<1x8x32xf32>
    %7 = vector.shape_cast %6 : vector<1x8x32xf32> to vector<8x32xf32>
    %c0_5 = arith.constant 0 : index
    %c0_6 = arith.constant 0 : index
    %c0_7 = arith.constant 0 : index
    %8 = vector.load %arg7[%c0_5, %c0_6, %c0_7] : memref<1x32x8xf32, #tpu.memory_space<vmem>>, vector<1x32x8xf32>
    %9 = vector.shape_cast %8 : vector<1x32x8xf32> to vector<32x8xf32>
    %cst = arith.constant dense<0.000000e+00> : vector<8x8xf32>
    %10 = tpu.matmul %7, %9, %cst {dimension_numbers = #tpu.dot_dimension_numbers<[1], [0], [0], [1], [0, 0, 1, 1], [], []>} : vector<8x32xf32>, vector<32x8xf32>, vector<8x8xf32> -> vector<8x8xf32>
    %11 = arith.index_cast %arg2 : i32 to index
    %c0_8 = arith.constant 0 : index
    %c0_9 = arith.constant 0 : index
    %12 = vector.load %arg13[%11, %c0_8, %c0_9] : memref<4x8x8xf32, #tpu.memory_space<vmem>>, vector<1x8x8xf32>
    %13 = vector.shape_cast %12 : vector<1x8x8xf32> to vector<8x8xf32>
    %14 = arith.index_cast %arg2 : i32 to index
    %c0_10 = arith.constant 0 : index
    %c0_11 = arith.constant 0 : index
    %15 = vector.load %arg14[%14, %c0_10, %c0_11] : memref<4x8x8xf32, #tpu.memory_space<vmem>>, vector<1x8x8xf32>
    %16 = vector.shape_cast %15 : vector<1x8x8xf32> to vector<8x8xf32>
    %cst_12 = arith.constant dense<0.000000e+00> : vector<8x8xf32>
    %17 = tpu.matmul %10, %13, %cst_12 {dimension_numbers = #tpu.dot_dimension_numbers<[1], [1], [0], [0], [0, 0, 1, 0], [], []>} : vector<8x8xf32>, vector<8x8xf32>, vector<8x8xf32> -> vector<8x8xf32>
    %c0_13 = arith.constant 0 : index
    %c0_14 = arith.constant 0 : index
    %c0_15 = arith.constant 0 : index
    %18 = vector.load %arg6[%c0_13, %c0_14, %c0_15] : memref<1x8x8xbf16, #tpu.memory_space<vmem>>, vector<1x8x8xbf16>
    %19 = vector.shape_cast %18 : vector<1x8x8xbf16> to vector<8x8xbf16>
    %20 = arith.extf %19 : vector<8x8xbf16> to vector<8x8xf32>
    %21 = arith.addf %17, %20 : vector<8x8xf32>
    %cst_16 = arith.constant dense<0xFF800000> : vector<8xf32>
    %22 = vector.multi_reduction <maximumf>, %21, %cst_16 [1] : vector<8x8xf32> to vector<8xf32>
    %23 = vector.shape_cast %22 : vector<8xf32> to vector<8x1xf32>
    %24 = vector.broadcast %23 : vector<8x1xf32> to vector<8x8xf32>
    %25 = arith.subf %21, %24 : vector<8x8xf32>
    %26 = math.exp %25 : vector<8x8xf32>
    %cst_17 = arith.constant dense<0.000000e+00> : vector<8xf32>
    %27 = vector.multi_reduction <add>, %26, %cst_17 [1] : vector<8x8xf32> to vector<8xf32>
    %28 = vector.shape_cast %27 : vector<8xf32> to vector<8x1xf32>
    %29 = tpu.reciprocal %28 {approx = true} : vector<8x1xf32> -> vector<8x1xf32>
    %30 = arith.mulf %28, %29 : vector<8x1xf32>
    %cst_18 = arith.constant 2.000000e+00 : f32
    %31 = vector.broadcast %cst_18 : f32 to vector<8x1xf32>
    %32 = arith.subf %31, %30 : vector<8x1xf32>
    %33 = arith.mulf %29, %32 : vector<8x1xf32>
    %34 = arith.mulf %28, %33 : vector<8x1xf32>
    %cst_19 = arith.constant 2.000000e+00 : f32
    %35 = vector.broadcast %cst_19 : f32 to vector<8x1xf32>
    %36 = arith.subf %35, %34 : vector<8x1xf32>
    %37 = arith.mulf %33, %36 : vector<8x1xf32>
    %cst_20 = arith.constant dense<0.000000e+00> : vector<8x8xf32>
    %38 = tpu.matmul %26, %16, %cst_20 {dimension_numbers = #tpu.dot_dimension_numbers<[1], [0], [0], [1], [0, 0, 1, 1], [], []>} : vector<8x8xf32>, vector<8x8xf32>, vector<8x8xf32> -> vector<8x8xf32>
    %39 = vector.broadcast %37 : vector<8x1xf32> to vector<8x8xf32>
    %40 = arith.mulf %38, %39 : vector<8x8xf32>
    %c0_21 = arith.constant 0 : index
    %c0_22 = arith.constant 0 : index
    %41 = vector.load %arg12[%c0_21, %c0_22] : memref<8x32xf32, #tpu.memory_space<vmem>>, vector<8x32xf32>
    %c0_23 = arith.constant 0 : index
    %c0_24 = arith.constant 0 : index
    %c0_25 = arith.constant 0 : index
    %42 = vector.load %arg10[%c0_23, %c0_24, %c0_25] : memref<1x8x32xf32, #tpu.memory_space<vmem>>, vector<1x8x32xf32>
    %43 = vector.shape_cast %42 : vector<1x8x32xf32> to vector<8x32xf32>
    %cst_26 = arith.constant dense<0.000000e+00> : vector<8x32xf32>
    %44 = tpu.matmul %40, %43, %cst_26 {dimension_numbers = #tpu.dot_dimension_numbers<[1], [0], [0], [1], [0, 0, 1, 1], [], []>} : vector<8x8xf32>, vector<8x32xf32>, vector<8x32xf32> -> vector<8x32xf32>
    %45 = arith.addf %41, %44 : vector<8x32xf32>
    %c0_27 = arith.constant 0 : index
    %c0_28 = arith.constant 0 : index
    %46 = vector.load %arg12[%c0_27, %c0_28] : memref<8x32xf32, #tpu.memory_space<vmem>>, vector<8x32xf32>
    tpu.vector_store %arg12[%c0_27, %c0_28], %45 {strides = array<i32>} : memref<8x32xf32, #tpu.memory_space<vmem>>, vector<8x32xf32>,
    %c3_i32 = arith.constant 3 : i32
    %47 = arith.cmpi eq, %arg2, %c3_i32 : i32
    %48 = arith.extui %47 : i1 to i32
    %c0_i32_29 = arith.constant 0 : i32
    %49 = arith.cmpi ne, %48, %c0_i32_29 : i32
    scf.if %49 {
      %c0_30 = arith.constant 0 : index
      %c0_31 = arith.constant 0 : index
      %50 = vector.load %arg12[%c0_30, %c0_31] : memref<8x32xf32, #tpu.memory_space<vmem>>, vector<8x32xf32>
      %c0_32 = arith.constant 0 : index
      %c0_33 = arith.constant 0 : index
      %c0_34 = arith.constant 0 : index
      %51 = vector.load %arg11[%c0_32, %c0_33, %c0_34] : memref<1x8x32xf32, #tpu.memory_space<vmem>>, vector<1x8x32xf32>
      %52 = vector.shape_cast %51 : vector<1x8x32xf32> to vector<8x32xf32>
      %53 = vector.shape_cast %50 : vector<8x32xf32> to vector<1x8x32xf32>
      tpu.vector_store %arg11[%c0_32, %c0_33, %c0_34], %53 {strides = array<i32>} : memref<1x8x32xf32, #tpu.memory_space<vmem>>, vector<1x8x32xf32>,
    } else {
    }
    return
  }
  func.func @transform_0(%arg0: i32, %arg1: i32, %arg2: i32) -> (i32, i32, i32) {
    %c0_i32 = arith.constant 0 : i32
    %c0_i32_0 = arith.constant 0 : i32
    return %arg0, %arg1, %c0_i32 : i32, i32, i32
  }
  func.func @transform_1(%arg0: i32, %arg1: i32, %arg2: i32) -> (i32, i32, i32) {
    %c0_i32 = arith.constant 0 : i32
    %c0_i32_0 = arith.constant 0 : i32
    %c0_i32_1 = arith.constant 0 : i32
    return %arg0, %c0_i32, %c0_i32_0 : i32, i32, i32
  }
  func.func @transform_2(%arg0: i32, %arg1: i32, %arg2: i32) -> (i32, i32, i32) {
    %c0_i32 = arith.constant 0 : i32
    %c0_i32_0 = arith.constant 0 : i32
    %c0_i32_1 = arith.constant 0 : i32
    return %arg0, %c0_i32, %c0_i32_0 : i32, i32, i32
  }
  func.func @transform_3(%arg0: i32, %arg1: i32, %arg2: i32) -> (i32, i32, i32) {
    %c0_i32 = arith.constant 0 : i32
    %c0_i32_0 = arith.constant 0 : i32
    return %arg0, %arg1, %c0_i32 : i32, i32, i32
  }
  func.func @transform_4(%arg0: i32, %arg1: i32, %arg2: i32) -> (i32, i32, i32) {
    %c0_i32 = arith.constant 0 : i32
    %c0_i32_0 = arith.constant 0 : i32
    %c0_i32_1 = arith.constant 0 : i32
    return %arg2, %c0_i32, %c0_i32_0 : i32, i32, i32
  }
  func.func @transform_5(%arg0: i32, %arg1: i32, %arg2: i32) -> (i32, i32, i32) {
    %c0_i32 = arith.constant 0 : i32
    %c0_i32_0 = arith.constant 0 : i32
    %c0_i32_1 = arith.constant 0 : i32
    return %arg2, %c0_i32, %c0_i32_0 : i32, i32, i32
  }
  func.func @transform_6(%arg0: i32, %arg1: i32, %arg2: i32) -> (i32, i32, i32) {
    %c0_i32 = arith.constant 0 : i32
    %c0_i32_0 = arith.constant 0 : i32
    %c0_i32_1 = arith.constant 0 : i32
    return %arg2, %c0_i32, %c0_i32_0 : i32, i32, i32
  }
  func.func @transform_7(%arg0: i32, %arg1: i32, %arg2: i32) -> (i32, i32, i32) {
    %c0_i32 = arith.constant 0 : i32
    %c0_i32_0 = arith.constant 0 : i32
    %c0_i32_1 = arith.constant 0 : i32
    return %arg2, %c0_i32, %c0_i32_0 : i32, i32, i32
  }
  func.func @transform_8(%arg0: i32, %arg1: i32, %arg2: i32) -> (i32, i32, i32) {
    %c0_i32 = arith.constant 0 : i32
    %c0_i32_0 = arith.constant 0 : i32
    return %arg0, %arg1, %c0_i32 : i32, i32, i32
  }
}

</mosaic_0001>

<bundles_post_ra>
// kernel: tpu_custom_call.1
= control target key start
LH: loop header
LB: loop body
LE: loop exit
PB: predicated region body
PF: predicated region fallthrough
CT: control target
= control target key end

     0   :  { %s2680_s0 = inlined_call_operand.hbm [shape: f32[2,8,32], index: 0, kind: input, shape index: {}]   ;;  %s2681_s1 = inlined_call_operand.hbm [shape: f32[2,8,32], index: 1, kind: input, shape index: {}]   ;;  %s2682_s2 = inlined_call_operand.hbm [shape: f32[2,8,32], index: 2, kind: input, shape index: {}]   ;;  %s2683_s3 = inlined_call_operand.hbm [shape: bf16[2,8,8], index: 3, kind: input, shape index: {}]   ;;  %s2684_s4 = inlined_call_operand.hbm [shape: f32[4,32,8], index: 4, kind: input, shape index: {}]   ;;  %s2685_s5 = inlined_call_operand.hbm [shape: f32[4,32,8], index: 5, kind: input, shape index: {}]   ;;  %s2686_s6 = inlined_call_operand.hbm [shape: f32[4,32,8], index: 6, kind: input, shape index: {}]   ;;  %s2687_s7 = inlined_call_operand.hbm [shape: f32[4,8,32], index: 7, kind: input, shape index: {}]   ;;  %s2688_s8 = inlined_call_operand.hbm [shape: f32[2,8,32], index: 8, kind: output, shape index: {}]  }
   0x1   :  { %2726 = sst [smem:[#allocation45_spill]] %s2681_s1 }
   0x2   :  { %2727 = sst [smem:[#allocation46_spill]] %s2683_s3 }
   0x3   :  { %2728 = sst [smem:[#allocation47_spill]] %s2685_s5 }
   0x4   :  { %2729 = sst [smem:[#allocation48_spill]] %s2687_s7 }
   0x5   :  { %2730 = sst [smem:[#allocation49_spill]] %s2688_s8 }
   0x6   :  { %13 = vsyncpa [#allocation6], 0 }
   0x7   :  { %15 = vsyncpa [#allocation6 + $0x1], 0 }
   0x8   :  { %16 = vsyncpa [#allocation9], 0 }
   0x9   :  { %18 = vsyncpa [#allocation9 + $0x1], 0 }
   0xa   :  { %19 = vsyncpa [#allocation12], 0 }
   0xb   :  { %21 = vsyncpa [#allocation12 + $0x1], 0 }
   0xc   :  { %22 = vsyncpa [#allocation15], 0 }
   0xd   :  { %24 = vsyncpa [#allocation15 + $0x1], 0 }
   0xe   :  { %25 = vsyncpa [#allocation18], 0 }
   0xf   :  { %27 = vsyncpa [#allocation18 + $0x1], 0 }
  0x10   :  { %28 = vsyncpa [#allocation7], 0 }
  0x11   :  { %30 = vsyncpa [#allocation7 + $0x1], 0  ;;  %s2107_s27 = smov 0   ;;  %s2109_s28 = smov 0  }
  0x12   :  { %s2111_s29 = smov 0   ;;  %s2113_s30 = smov 0  }
  0x13   :  { %s2115_s9 = smov 0   ;;  %s2117_s10 = smov 0  }
  0x14   :  { %s2119_s11 = smov 0   ;;  %s2121_s12 = smov 0  }
  0x15   :  { %s2123_s13 = smov 0   ;;  %s2125_s14 = smov 0  }
  0x16   :  { %s2127_s15 = smov 0  }
  0x17 LB: > { %2731 = sst [smem:[#allocation27_spill]] %s2009_s28  ;;  %s2161_s16 = sadd.s32 4294967295, %s2045_s15   ;;  %s2045_s15 = sphi %s2127_s15, %s36_s15   ;;  %s2041_s14 = sphi %s2125_s14, %s2811_s14   ;;  %s2037_s13 = sphi %s2123_s13, %s2810_s13   ;;  %s2033_s12 = sphi %s2121_s12, %s2809_s12   ;;  %s2029_s11 = sphi %s2119_s11, %s2808_s11   ;;  %s2025_s10 = sphi %s2117_s10, %s2813_s10   ;;  %s2021_s9 = sphi %s2115_s9, %s2812_s9   ;;  %s2017_s30 = sphi %s2113_s30, %s2806_s30   ;;  %s2013_s29 = sphi %s2111_s29, %s2805_s29   ;;  %s2009_s28 = sphi %s2109_s28, %s2804_s28   ;;  %s2005_s27 = sphi %s2107_s27, %s2803_s27  }
  0x18   : > { %2732 = sst [smem:[#allocation28_spill]] %s2013_s29  ;;  %s1379_s17 = sadd.s32 4294967294, %s2045_s15  }
  0x19   : > { %2733 = sst [smem:[#allocation29_spill]] %s2017_s30  ;;  %p71_p0 = scmp.ne.s32.totalorder %s2025_s10, %s2021_s9 }
  0x1a   : > { %2734 = sst [smem:[#allocation30_spill]] %s2021_s9  ;;  %p72_p1 = scmp.eq.s32.totalorder %s2045_s15, 0 }
  0x1b   : > { %2735 = sst [smem:[#allocation31_spill]] %s2029_s11  ;;  %p77_p2 = scmp.ne.s32.totalorder %s2021_s9, %s2017_s30 }
  0x1c   : > { %2736 = sst [smem:[#allocation32_spill]] %s2033_s12  ;;  %p78_p3 = scmp.eq.s32.totalorder %s2161_s16, 0 }
  0x1d   : > { %2737 = sst [smem:[#allocation33_spill]] %s2037_s13  ;;  %p2172_p4 = por %p72_p1, %p71_p0 }
  0x1e   : > { %2738 = sst [smem:[#allocation34_spill]] %s2041_s14  ;;  %p177_p5 = scmp.ne.s32.totalorder %s2013_s29, %s2009_s28 }
  0x1f   : > { %2739 = sst [smem:[#allocation35_spill]] %s2045_s15  ;;  %p2178_p6 = por %p78_p3, %p77_p2 }
  0x20   : > { %2740 = sst [smem:[#allocation36_spill]] %s2161_s16  ;;  %p183_p7 = scmp.ne.s32.totalorder %s2009_s28, %s2005_s27 }
  0x21   : > { %s2742_s21 = scalar_select %p2178_p6, 1, 0 }
  0x22   : > { %p2183_p8 = por %p177_p5, %p72_p1  ;;  %p287_p9 = scmp.eq.s32.totalorder %s2161_s16, 7 }
  0x23   : > { %2743 = sst [smem:[#allocation37_spill]] %s2742_s21  ;;  %p2188_p10 = por %p183_p7, %p78_p3 }
  0x24   : > { %p293_p11 = scmp.eq.s32.totalorder %s1379_s17, 7  ;;  %p2192_p12 = por %p287_p9, %p71_p0 }
  0x25   : > { %s2745_s23 = scalar_select %p2188_p10, 1, 0 }
  0x26   : > { %s2747_s24 = scalar_select %p2192_p12, 1, 0 }
  0x27   : > { %2746 = sst [smem:[#allocation38_spill]] %s2745_s23  ;;  %p2196_p13 = por %p293_p11, %p77_p2 }
  0x28   : > { %2748 = sst [smem:[#allocation39_spill]] %s2747_s24  ;;  %p1563_p6 = scmp.lt.s32.totalorder %s2045_s15, 8 }
  0x29   : > { %s2749_s25 = scalar_select %p2196_p13, 1, 0 }
  0x2a   : > { %s2202_s26 = sand.u32 1, %s2025_s10   ;;  %s2205_s27 = sshll.u32 %s2041_s14, 7 }
  0x2b   : > { %2750 = sst [smem:[#allocation40_spill]] %s2749_s25  ;;  %s2208_s19 = sshll.u32 %s2202_s26, 3 }
  0x2c   : > { %p2212_p1 = pnand %p1563_p6, %p2172_p4  ;;  %s2217_s18 = sand.u32 1, %s2045_s15  }
  0x2d   : > { %s2752_s1 = sld [smem:[#allocation45_spill]]  ;;  %s336_s24 = scalar_lea.vmem [#allocation8], %s2208_s19 }
  0x2e   : > { %s2751_s17 = scalar_select %p2212_p1, 1, 0 }
  0x2f   : > { %s343_s20 = sshll.u32 %s336_s24, 4  ;;  %p2230_p0 = pnand %p1563_p6, %p2183_p8  ;;  %s2226_s20 = int_to_ptr.vmem [resolvable:$true] %s343_s20 }
  0x30   : > { %p2239_p3 = pneg %p2212_p1 }
  0x31   : > { %s2753_s12 = scalar_select %p2230_p0, 1, 0 }
  0x32   : > { %s2754_s30 = scalar_select %p2239_p3, 1, 0 }
  0x33   : > { %s2223_s8 = scalar_lea.hbm %s2752_s1, %s2205_s27  ;;  %s1668_s22 = scalar_lea.hbm %s2752_s1, 256 }
  0x34   : > { %s1663_s23 = scalar_lea.hbm %s2223_s8, 128  ;;  %p1669_p6 = scmp.lt.u32.totalorder %s2223_s8, %s2752_s1 }
  0x35   : > { %p1664_p2 = scmp.ne.s32.totalorder %s2223_s8, %s1663_s23  ;;  %p1670_p7 = scmp.lt.u32.totalorder %s1668_s22, %s1663_s23 }
  0x36   : > { %p1672_p9 = scmp.lt.u32.totalorder %s1663_s23, %s2223_s8 }
  0x37   : > { %p1666_p4 = pnand %p2239_p3, %p1664_p2  ;;  %p1671_p8 = por %p1670_p7, %p1669_p6 }
  0x39   : > { %p1667_p5 = pneg %p1666_p4  ;;  %p1673_p11 = por %p1672_p9, %p1671_p8 }
  0x3b   : > { %p1674_p13 = pnand %p1673_p11, %p1667_p5 }
  0x3d   : > { %1677 = shalt.err (!%p1674_p13)
}
  0x3e   : > { %s1678_s11 = scalar_lea.vmem %s2226_s20, 128  ;;  %s2047_s24 = smov [#allocation8]  }
  0x3f   : > { %p1679_p2 = scmp.ne.s32.totalorder %s2226_s20, %s1678_s11  ;;  %s1683_s25 = sshll.u32 %s2047_s24, 4  ;;  %s1684_s25 = int_to_ptr.vmem [resolvable:$false] %s1683_s25 }
  0x40   : > { %s1685_s28 = scalar_lea.vmem %s1684_s25, 256  ;;  %p1686_p10 = scmp.lt.s32.totalorder %s2226_s20, %s1684_s25 }
  0x41   : > { %p1681_p4 = pnand %p1679_p2, %p2239_p3  ;;  %p1687_p0 = scmp.lt.s32.totalorder %s1685_s28, %s1678_s11 }
  0x43   : > { %p1682_p12 = pneg %p1681_p4  ;;  %p1688_p6 = por %p1687_p0, %p1686_p10 }
  0x45   : > { %p1689_p7 = pnand %p1688_p6, %p1682_p12 }
  0x47   : > { %1692 = shalt.err (!%p1689_p7)
}
  0x48   : > { %s2755_s16 = scalar_lea.sflag [#allocation9], %s2217_s18  ;;  %p1401_p13 = scmp.ge.s32.totalorder %s2045_s15, 1 }
  0x49   : > { %1540 = dma.hbm_to_vmem [thread:$0]  (!%p2212_p1), %s2223_s8, 128, %s2226_s20, %s2755_s16  }
  0x4a   : > { %p466_p5 = scmp.lt.s32.totalorder %s2045_s15, 9  ;;  %s1388_s23 = sshll.u32 %s2202_s26, 2 }
  0x4b   : > { %s1389_s22 = sshll.u32 %s2041_s14, 6  ;;  %s372_s24 = scalar_lea.vmem [#allocation11], %s1388_s23 }
  0x4c   : > { %p2267_p8 = pnand %p1401_p13, %p466_p5  ;;  %s380_s25 = sshll.u32 %s372_s24, 4  ;;  %s381_s25 = int_to_ptr.vmem [resolvable:$true] %s380_s25 }
  0x4d   : > { %s2758_s3 = sld [smem:[#allocation46_spill]]  ;;  %s2710_s8 = scalar_lea.sflag [#allocation12], %s2217_s18 }
  0x4e   : > { %s2756_s11 = scalar_select %p2267_p8, 1, 0 }
  0x50   : > { %2757 = sst [smem:[#allocation41_spill]] %s2756_s11 }
  0x53   : > { %s2275_s21 = scalar_lea.hbm %s2758_s3, %s1389_s22  ;;  %s1698_s23 = scalar_lea.hbm %s2758_s3, 128 }
  0x54   : > { %s1693_s20 = scalar_lea.hbm %s2275_s21, 64  ;;  %p1699_p9 = scmp.lt.u32.totalorder %s2275_s21, %s2758_s3 }
  0x55   : > { %p1694_p10 = scmp.ne.s32.totalorder %s2275_s21, %s1693_s20  ;;  %p1700_p11 = scmp.lt.u32.totalorder %s1698_s23, %s1693_s20 }
  0x56   : > { %p1702_p4 = scmp.lt.u32.totalorder %s1693_s20, %s2275_s21 }
  0x57   : > { %p1696_p12 = pnand %p1694_p10, %p2239_p3  ;;  %p1701_p2 = por %p1700_p11, %p1699_p9 }
  0x59   : > { %p1697_p0 = pneg %p1696_p12  ;;  %p1703_p6 = por %p1702_p4, %p1701_p2 }
  0x5b   : > { %p1704_p7 = pnand %p1703_p6, %p1697_p0 }
  0x5d   : > { %1707 = shalt.err (!%p1704_p7)
}
  0x5e   : > { %s1708_s1 = scalar_lea.vmem %s381_s25, 64  ;;  %s2048_s22 = smov [#allocation11]  }
  0x5f   : > { %p1709_p13 = scmp.ne.s32.totalorder %s381_s25, %s1708_s1  ;;  %s1713_s28 = sshll.u32 %s2048_s22, 4  ;;  %s1714_s28 = int_to_ptr.vmem [resolvable:$false] %s1713_s28 }
  0x60   : > { %s1715_s15 = scalar_lea.vmem %s1714_s28, 128  ;;  %p1716_p12 = scmp.lt.s32.totalorder %s381_s25, %s1714_s28 }
  0x61   : > { %p1711_p5 = pnand %p1709_p13, %p2239_p3  ;;  %p1717_p8 = scmp.lt.s32.totalorder %s1715_s15, %s1708_s1 }
  0x63   : > { %p1712_p10 = pneg %p1711_p5  ;;  %p1718_p1 = por %p1717_p8, %p1716_p12 }
  0x65   : > { %p1719_p9 = pnand %p1718_p1, %p1712_p10 }
  0x67   : > { %1722 = shalt.err (!%p1719_p9)
}
  0x68   : > { %p2759_p11 = scmp.ne.s32.totalorder %s2751_s17, 0  ;;  %s170_s9 = sadd.s32 1, %s2013_s29 }
  0x69   : > { %s2299_s20 = sand.u32 1, %s2013_s29   ;;  %s48_s16 = sadd.s32 1, %s2037_s13 }
  0x6a   : > { %1546 = dma.hbm_to_vmem [thread:$0]  (!%p2759_p11), %s2275_s21, 64, %s381_s25, %s2710_s8  }
  0x6b   : > { %s2303_s23 = sshll.u32 %s2299_s20, 5  ;;  %p49_p1 = scmp.ge.s32.totalorder %s48_s16, 4 }
  0x6c   : > { %s2306_s24 = sshll.u32 %s2037_s13, 9  ;;  %s2761_s1 = sadd.s32 1, %s2041_s14 }
  0x6d   : > { %s2815_s16 = smov (%p49_p1, %s48_s16), 0  ;;  %s2817_s1 = smov (!%p49_p1, %s2761_s1), %s2041_s14 }
  0x6e   : > { %2760 = sst [smem:[#allocation42_spill]] %s2815_s16  ;;  %s167_s21 = ssub.s32 %s2037_s13, %s2815_s16 }
  0x6f   : > { %p57_p8 = scmp.ge.s32.totalorder %s2817_s1, 2  ;;  %p168_p0 = scmp.eq.s32.totalorder %s167_s21, 0 }
  0x70   : > { %s2762_s5 = sld [smem:[#allocation47_spill]]  ;;  %s412_s15 = scalar_lea.vmem [#allocation14], %s2303_s23 }
  0x71   : > { %s419_s8 = sshll.u32 %s412_s15, 4  ;;  %s2819_s1 = smov (%p57_p8, %s2817_s1), 0  ;;  %s2329_s8 = int_to_ptr.vmem [resolvable:$true] %s419_s8 }
  0x72   : > { %2763 = sst [smem:[#allocation43_spill]] %s2819_s1  ;;  %s59_s11 = ssub.s32 %s2041_s14, %s2819_s1 }
  0x73   : > { %s2325_s3 = scalar_select %p168_p0, %s2013_s29, %s170_s9  }
  0x74   : > { %p2331_p2 = scmp.eq.s32.totalorder %s59_s11, 0  ;;  %p2766_p6 = scmp.ne.s32.totalorder %s2753_s12, 0 }
  0x75   : > { %2764 = sst [smem:[#allocation44_spill]] %s2325_s3 }
  0x76   : > { %s2319_s28 = scalar_lea.hbm %s2762_s5, %s2306_s24  ;;  %p2340_p7 = pneg %p2766_p6 }
  0x77   : > { %s2765_s21 = scalar_select %p2331_p2, 1, 0 }
  0x78   : > { %s1723_s22 = scalar_lea.hbm %s2319_s28, 512  ;;  %s1728_s1 = scalar_lea.hbm %s2762_s5, 2048 }
  0x79   : > { %p1724_p4 = scmp.ne.s32.totalorder %s2319_s28, %s1723_s22  ;;  %p1729_p10 = scmp.lt.u32.totalorder %s2319_s28, %s2762_s5 }
  0x7a   : > { %s2767_s16 = scalar_select %p2340_p7, 1, 0 }
  0x7b   : > { %p1726_p13 = pnand %p2340_p7, %p1724_p4  ;;  %p1730_p12 = scmp.lt.u32.totalorder %s1728_s1, %s1723_s22 }
  0x7c   : > { %p1732_p1 = scmp.lt.u32.totalorder %s1723_s22, %s2319_s28 }
  0x7d   : > { %p1727_p5 = pneg %p1726_p13  ;;  %p1731_p9 = por %p1730_p12, %p1729_p10 }
  0x7f   : > { %p1733_p8 = por %p1732_p1, %p1731_p9 }
  0x81   : > { %p1734_p0 = pnand %p1733_p8, %p1727_p5 }
  0x83   : > { %1737 = shalt.err (!%p1734_p0)
}
  0x84   : > { %s1738_s25 = scalar_lea.vmem %s2329_s8, 512  ;;  %s2049_s9 = smov [#allocation14]  }
  0x85   : > { %p1739_p4 = scmp.ne.s32.totalorder %s2329_s8, %s1738_s25  ;;  %s1743_s15 = sshll.u32 %s2049_s9, 4  ;;  %s1744_s15 = int_to_ptr.vmem [resolvable:$false] %s1743_s15 }
  0x86   : > { %s1745_s14 = scalar_lea.vmem %s1744_s15, 1024  ;;  %p1746_p3 = scmp.lt.s32.totalorder %s2329_s8, %s1744_s15 }
  0x87   : > { %p1741_p13 = pnand %p1739_p4, %p2340_p7  ;;  %p1747_p2 = scmp.lt.s32.totalorder %s1745_s14, %s1738_s25 }
  0x89   : > { %p1742_p11 = pneg %p1741_p13  ;;  %p1748_p10 = por %p1747_p2, %p1746_p3 }
  0x8b   : > { %p1749_p12 = pnand %p1748_p10, %p1742_p11 }
  0x8d   : > { %1752 = shalt.err (!%p1749_p12)
}
  0x8e   : > { %s2720_s1 = smov 128   ;;  %s2051_s22 = smov 8  }
  0x8f   : > { %s2768_s25 = scalar_lea.sflag [#allocation15], %s2217_s18  ;;  %s2769_s11 = sadd.s32 1, %s2025_s10 }
  0x90   : > { %1552 = dma.hbm_to_vmem [thread:$0]  (!%p2766_p6), %s2319_s28, 512, %s2329_s8, %s2768_s25, %s2720_s1, %s2720_s1, %s2051_s22  }
  0x91   : > { %p2770_p3 = scmp.ne.s32.totalorder %s2765_s21, 0  ;;  %s2379_s5 = scalar_lea.hbm %s2680_s0, %s2205_s27 }
  0x92   : > { %s317_s3 = scalar_lea.vmem [#allocation5], %s2208_s19  ;;  %s2388_s8 = scalar_lea.hbm %s2682_s2, %s2205_s27 }
  0x93   : > { %s2373_s9 = scalar_select %p2770_p3, %s2025_s10, %s2769_s11  }
  0x94   : > { %s325_s29 = sshll.u32 %s317_s3, 4  ;;  %s314_s28 = scalar_lea.sflag [#allocation6], %s2202_s26  ;;  %s2382_s29 = int_to_ptr.vmem [resolvable:$true] %s325_s29 }
  0x95   : > { %s1753_s21 = scalar_lea.hbm %s2379_s5, 128  ;;  %p2771_p2 = scmp.ne.s32.totalorder %s2754_s30, 0 }
  0x96   : > { %p1754_p11 = scmp.ne.s32.totalorder %s2379_s5, %s1753_s21  ;;  %s1758_s15 = scalar_lea.hbm %s2680_s0, 256 }
  0x97   : > { %p1759_p1 = scmp.lt.u32.totalorder %s2379_s5, %s2680_s0  ;;  %p1760_p8 = scmp.lt.u32.totalorder %s1758_s15, %s1753_s21 }
  0x98   : > { %p1756_p5 = pnand %p1754_p11, %p2771_p2  ;;  %p1762_p4 = scmp.lt.u32.totalorder %s1753_s21, %s2379_s5 }
  0x99   : > { %p1761_p0 = por %p1760_p8, %p1759_p1 }
  0x9a   : > { %p1757_p9 = pneg %p1756_p5 }
  0x9b   : > { %p1763_p13 = por %p1762_p4, %p1761_p0 }
  0x9d   : > { %p1764_p10 = pnand %p1763_p13, %p1757_p9 }
  0x9f   : > { %1767 = shalt.err (!%p1764_p10)
}
  0xa0   : > { %s1768_s3 = scalar_lea.vmem %s2382_s29, 128  ;;  %s2052_s7 = smov [#allocation5]  }
  0xa1   : > { %p1769_p12 = scmp.ne.s32.totalorder %s2382_s29, %s1768_s3  ;;  %s1773_s13 = sshll.u32 %s2052_s7, 4  ;;  %s1774_s13 = int_to_ptr.vmem [resolvable:$false] %s1773_s13 }
  0xa2   : > { %s1775_s26 = scalar_lea.vmem %s1774_s13, 256  ;;  %p1776_p5 = scmp.lt.s32.totalorder %s2382_s29, %s1774_s13 }
  0xa3   : > { %p1771_p3 = pnand %p1769_p12, %p2771_p2  ;;  %p1777_p6 = scmp.lt.s32.totalorder %s1775_s26, %s1768_s3 }
  0xa5   : > { %p1772_p11 = pneg %p1771_p3  ;;  %p1778_p1 = por %p1777_p6, %p1776_p5 }
  0xa7   : > { %p1779_p8 = pnand %p1778_p1, %p1772_p11 }
  0xa9   : > { %1782 = shalt.err (!%p1779_p8)
}
  0xaa   : > { %p2772_p9 = scmp.ne.s32.totalorder %s2751_s17, 0  ;;  %s354_s27 = scalar_lea.vmem [#allocation10], %s2208_s19 }
  0xab   : > { %s361_s1 = sshll.u32 %s354_s27, 4  ;;  %s2417_s11 = scalar_lea.hbm %s2684_s4, %s2306_s24  ;;  %s362_s1 = int_to_ptr.vmem [resolvable:$true] %s361_s1 }
  0xac   : > { %1537 = dma.hbm_to_vmem [thread:$0]  (!%p2772_p9), %s2379_s5, 128, %s2382_s29, %s314_s28  }
  0xad   : > { %s1783_s15 = scalar_lea.hbm %s2388_s8, 128  ;;  %s1788_s7 = scalar_lea.hbm %s2682_s2, 256 }
  0xae   : > { %p1784_p6 = scmp.ne.s32.totalorder %s2388_s8, %s1783_s15  ;;  %p1789_p13 = scmp.lt.u32.totalorder %s2388_s8, %s2682_s2 }
  0xaf   : > { %p1790_p10 = scmp.lt.u32.totalorder %s1788_s7, %s1783_s15  ;;  %p1792_p3 = scmp.lt.u32.totalorder %s1783_s15, %s2388_s8 }
  0xb0   : > { %p1786_p0 = pnand %p1784_p6, %p2771_p2 }
  0xb1   : > { %p1791_p12 = por %p1790_p10, %p1789_p13 }
  0xb2   : > { %p1787_p4 = pneg %p1786_p0 }
  0xb3   : > { %p1793_p11 = por %p1792_p3, %p1791_p12 }
  0xb5   : > { %p1794_p5 = pnand %p1793_p11, %p1787_p4 }
  0xb7   : > { %1797 = shalt.err (!%p1794_p5)
}
  0xb8   : > { %s1798_s5 = scalar_lea.vmem %s362_s1, 128  ;;  %s2053_s29 = smov [#allocation10]  }
  0xb9   : > { %p1799_p1 = scmp.ne.s32.totalorder %s362_s1, %s1798_s5  ;;  %s1803_s19 = sshll.u32 %s2053_s29, 4  ;;  %s1804_s19 = int_to_ptr.vmem [resolvable:$false] %s1803_s19 }
  0xba   : > { %s1805_s28 = scalar_lea.vmem %s1804_s19, 256  ;;  %p1806_p0 = scmp.lt.s32.totalorder %s362_s1, %s1804_s19 }
  0xbb   : > { %p1801_p8 = pnand %p1799_p1, %p2771_p2  ;;  %p1807_p7 = scmp.lt.s32.totalorder %s1805_s28, %s1798_s5 }
  0xbd   : > { %p1802_p6 = pneg %p1801_p8  ;;  %p1808_p9 = por %p1807_p7, %p1806_p0 }
  0xbf   : > { %p1809_p10 = pnand %p1808_p9, %p1802_p6 }
  0xc1   : > { %1812 = shalt.err (!%p1809_p10)
}
  0xc2   : > { %p2773_p13 = scmp.ne.s32.totalorder %s2751_s17, 0  ;;  %s2774_s27 = scalar_lea.sflag [#allocation9], %s2217_s18 }
  0xc3   : > { %s391_s30 = scalar_lea.vmem [#allocation13], %s2303_s23  ;;  %s2445_s14 = scalar_lea.hbm %s2686_s6, %s2306_s24 }
  0xc4   : > { %1543 = dma.hbm_to_vmem [thread:$0]  (!%p2773_p13), %s2388_s8, 128, %s362_s1, %s2774_s27  }
  0xc5   : > { %s398_s21 = sshll.u32 %s391_s30, 4  ;;  %s1813_s17 = scalar_lea.hbm %s2417_s11, 512  ;;  %s2439_s21 = int_to_ptr.vmem [resolvable:$true] %s398_s21 }
  0xc6   : > { %p1814_p7 = scmp.ne.s32.totalorder %s2417_s11, %s1813_s17  ;;  %p2775_p2 = scmp.ne.s32.totalorder %s2767_s16, 0 }
  0xc7   : > { %s1818_s13 = scalar_lea.hbm %s2684_s4, 2048  ;;  %p1819_p12 = scmp.lt.u32.totalorder %s2417_s11, %s2684_s4 }
  0xc8   : > { %p1816_p9 = pnand %p1814_p7, %p2775_p2  ;;  %p1820_p3 = scmp.lt.u32.totalorder %s1818_s13, %s1813_s17 }
  0xc9   : > { %p1822_p5 = scmp.lt.u32.totalorder %s1813_s17, %s2417_s11 }
  0xca   : > { %p1817_p4 = pneg %p1816_p9  ;;  %p1821_p11 = por %p1820_p3, %p1819_p12 }
  0xcc   : > { %p1823_p1 = por %p1822_p5, %p1821_p11 }
  0xce   : > { %p1824_p8 = pnand %p1823_p1, %p1817_p4 }
  0xd0   : > { %1827 = shalt.err (!%p1824_p8)
}
  0xd1   : > { %s1828_s24 = scalar_lea.vmem %s2439_s21, 512  ;;  %s2054_s1 = smov [#allocation13]  }
  0xd2   : > { %p1829_p6 = scmp.ne.s32.totalorder %s2439_s21, %s1828_s24  ;;  %s1833_s5 = sshll.u32 %s2054_s1, 4  ;;  %s1834_s5 = int_to_ptr.vmem [resolvable:$false] %s1833_s5 }
  0xd3   : > { %s1835_s29 = scalar_lea.vmem %s1834_s5, 1024  ;;  %p1836_p13 = scmp.lt.s32.totalorder %s2439_s21, %s1834_s5 }
  0xd4   : > { %p1831_p0 = pnand %p1829_p6, %p2775_p2  ;;  %p1837_p7 = scmp.lt.s32.totalorder %s1835_s29, %s1828_s24 }
  0xd6   : > { %p1832_p10 = pneg %p1831_p0  ;;  %p1838_p9 = por %p1837_p7, %p1836_p13 }
  0xd8   : > { %p1839_p12 = pnand %p1838_p9, %p1832_p10 }
  0xda   : > { %1842 = shalt.err (!%p1839_p12)
}
  0xdb   : > { %p2776_p4 = scmp.ne.s32.totalorder %s2753_s12, 0  ;;  %s2777_s19 = smov 128  }
  0xdc   : > { %s2778_s28 = scalar_lea.sflag [#allocation12], %s2217_s18  ;;  %s433_s27 = scalar_lea.vmem [#allocation16], %s2303_s23 }
  0xdd   : > { %1549 = dma.hbm_to_vmem [thread:$0]  (!%p2776_p4), %s2417_s11, 512, %s2439_s21, %s2778_s28, %s2777_s19, %s2777_s19, %s2051_s22  }
  0xde   : > { %s440_s30 = sshll.u32 %s433_s27, 4  ;;  %s1399_s25 = sshll.u32 %s2299_s20, 3  ;;  %s2474_s30 = int_to_ptr.vmem [resolvable:$true] %s440_s30 }
  0xdf   : > { %s1843_s15 = scalar_lea.hbm %s2445_s14, 512  ;;  %s1848_s7 = scalar_lea.hbm %s2686_s6, 2048 }
  0xe0   : > { %p1844_p3 = scmp.ne.s32.totalorder %s2445_s14, %s1843_s15  ;;  %p1849_p1 = scmp.lt.u32.totalorder %s2445_s14, %s2686_s6 }
  0xe1   : > { %p1850_p8 = scmp.lt.u32.totalorder %s1848_s7, %s1843_s15  ;;  %p1852_p0 = scmp.lt.u32.totalorder %s1843_s15, %s2445_s14 }
  0xe2   : > { %p1846_p11 = pnand %p1844_p3, %p2775_p2 }
  0xe3   : > { %p1851_p6 = por %p1850_p8, %p1849_p1 }
  0xe4   : > { %p1847_p5 = pneg %p1846_p11 }
  0xe5   : > { %p1853_p10 = por %p1852_p0, %p1851_p6 }
  0xe7   : > { %p1854_p13 = pnand %p1853_p10, %p1847_p5 }
  0xe9   : > { %1857 = shalt.err (!%p1854_p13)
}
  0xea   : > { %s1858_s23 = scalar_lea.vmem %s2474_s30, 512  ;;  %s2055_s11 = smov [#allocation16]  }
  0xeb   : > { %p1859_p7 = scmp.ne.s32.totalorder %s2474_s30, %s1858_s23  ;;  %s1863_s21 = sshll.u32 %s2055_s11, 4  ;;  %s1864_s21 = int_to_ptr.vmem [resolvable:$false] %s1863_s21 }
  0xec   : > { %s1865_s8 = scalar_lea.vmem %s1864_s21, 1024  ;;  %p1866_p3 = scmp.lt.s32.totalorder %s2474_s30, %s1864_s21 }
  0xed   : > { %p1861_p9 = pnand %p1859_p7, %p2775_p2  ;;  %p1867_p11 = scmp.lt.s32.totalorder %s1865_s8, %s1858_s23 }
  0xef   : > { %p1862_p12 = pneg %p1861_p9  ;;  %p1868_p1 = por %p1867_p11, %p1866_p3 }
  0xf1   : > { %p1869_p8 = pnand %p1868_p1, %p1862_p12 }
  0xf3   : > { %1872 = shalt.err (!%p1869_p8)
}
  0xf4   : > { %s2779_s24 = scalar_lea.sflag [#allocation15], %s2217_s18  ;;  %s2780_s1 = sld [smem:[#allocation33_spill]] }
  0xf5   : > { %1555 = dma.hbm_to_vmem [thread:$0]  (!%p2776_p4), %s2445_s14, 512, %s2474_s30, %s2779_s24, %s2777_s19, %s2777_s19, %s2051_s22  }
  0xf6   : > { %s2781_s27 = sld [smem:[#allocation48_spill]]  ;;  %s454_s3 = scalar_lea.vmem [#allocation17], %s1399_s25 }
  0xf7   : > { %s461_s18 = sshll.u32 %s454_s3, 4  ;;  %s451_s7 = scalar_lea.sflag [#allocation18], %s2299_s20  ;;  %s462_s18 = int_to_ptr.vmem [resolvable:$true] %s461_s18 }
  0xfa   : > { %s1400_s5 = sshll.u32 %s2780_s1, 7 }
  0xfc   : > { %s2782_s17 = smov %s2781_s27  ;;  %s2507_s15 = scalar_lea.hbm %s2781_s27, %s1400_s5 }
  0xfd   : > { %s1873_s13 = scalar_lea.hbm %s2507_s15, 128  ;;  %s1878_s19 = scalar_lea.hbm %s2782_s17, 512 }
  0xfe   : > { %p1874_p5 = scmp.ne.s32.totalorder %s2507_s15, %s1873_s13  ;;  %p1879_p10 = scmp.lt.u32.totalorder %s2507_s15, %s2782_s17 }
  0xff   : > { %p1880_p13 = scmp.lt.u32.totalorder %s1878_s19, %s1873_s13  ;;  %p1882_p9 = scmp.lt.u32.totalorder %s1873_s13, %s2507_s15 }
 0x100   : > { %p1876_p6 = pnand %p1874_p5, %p2775_p2 }
 0x101   : > { %p1881_p7 = por %p1880_p13, %p1879_p10 }
 0x102   : > { %p1877_p0 = pneg %p1876_p6 }
 0x103   : > { %p1883_p12 = por %p1882_p9, %p1881_p7 }
 0x105   : > { %p1884_p3 = pnand %p1883_p12, %p1877_p0 }
 0x107   : > { %1887 = shalt.err (!%p1884_p3)
}
 0x108   : > { %s1888_s20 = scalar_lea.vmem %s462_s18, 128  ;;  %s2056_s25 = smov [#allocation17]  }
 0x109   : > { %p1889_p11 = scmp.ne.s32.totalorder %s462_s18, %s1888_s20  ;;  %s1893_s23 = sshll.u32 %s2056_s25, 4  ;;  %s1894_s23 = int_to_ptr.vmem [resolvable:$false] %s1893_s23 }
 0x10a   : > { %s1895_s11 = scalar_lea.vmem %s1894_s23, 256  ;;  %p1896_p5 = scmp.lt.s32.totalorder %s462_s18, %s1894_s23 }
 0x10b   : > { %p1891_p1 = pnand %p1889_p11, %p2775_p2  ;;  %p1897_p6 = scmp.lt.s32.totalorder %s1895_s11, %s1888_s20 }
 0x10d   : > { %p1892_p8 = pneg %p1891_p1  ;;  %p1898_p4 = por %p1897_p6, %p1896_p5 }
 0x10f   : > { %p1899_p10 = pnand %p1898_p4, %p1892_p8 }
 0x111   : > { %1902 = shalt.err (!%p1899_p10)
}
 0x112   : > { %p2783_p13 = scmp.ne.s32.totalorder %s2753_s12, 0  ;;  %s2784_s21 = sld [smem:[#allocation41_spill]] }
 0x114   : > { %1558 = dma.hbm_to_vmem [thread:$0]  (!%p2783_p13), %s2507_s15, 128, %s462_s18, %s451_s7  }
 0x118   : > { %p2785_p0 = scmp.ne.s32.totalorder %s2784_s21, 0 }
 0x119   : > { %s2786_s8 = sld [smem:[#allocation30_spill]] (!%p2785_p0)  ;;  %s2787_s16 = sld [smem:[#allocation37_spill]] (!%p2785_p0) }
 0x11a   : > { %470 = sbr.rel (%p2785_p0) target bundleno = 1402 (0x57a), region = 52 }
 0x11f   : > { %s2532_s24 = sand.u32 (!%p2785_p0), 1, %s2786_s8   ;;  %p2788_p2 = scmp.ne.s32.totalorder (!%p2785_p0), %s2787_s16, 0 }
 0x120   : > { %s2535_s1 = sshll.u32 (!%p2785_p0), %s2532_s24, 3  ;;  %s473_s5 = scalar_lea.sflag (!%p2785_p0), [#allocation6], %s2532_s24 }
 0x121   : > { %s476_s29 = scalar_lea.vmem [#allocation5], %s2535_s1 }
 0x122   : > { %1976 = dma.done.wait (%p2788_p2), %s473_s5, 128  }
 0x123   : > { %1978 = vsyncadd (%p2788_p2), %s473_s5, 4294967168  ;;  %s2789_s12 = sld [smem:[#allocation36_spill]]  ;;  %s485_s15 = scalar_lea.vmem [#allocation8], %s2535_s1 }
 0x129   : > { %s481_s28 = sand.u32 1, %s2789_s12  }
 0x12a   : > { %s482_s27 = scalar_lea.sflag [#allocation9], %s481_s28 }
 0x12b   : > { %1980 = dma.done.wait (%p2788_p2), %s482_s27, 256  }
 0x12c   : > { %1982 = vsyncadd (%p2788_p2), %s482_s27, 4294967040  ;;  %s1405_s3 = sshll.u32 %s2532_s24, 2  ;;  %s494_s18 = scalar_lea.vmem [#allocation10], %s2535_s1 }
 0x12d   : > { %s500_s7 = scalar_lea.sflag [#allocation12], %s481_s28  ;;  %s2551_s13 = scalar_lea.vmem [#allocation11], %s1405_s3 }
 0x12e   : > { %1984 = dma.done.wait (%p2788_p2), %s500_s7, 64  }
 0x12f   : > { %1986 = vsyncadd (%p2788_p2), %s500_s7, 4294967232  ;;  %s2790_s22 = sld [smem:[#allocation27_spill]]  ;;  %s2791_s14 = sld [smem:[#allocation38_spill]] }
 0x135   : > { %s510_s19 = sand.u32 1, %s2790_s22   ;;  %p2792_p4 = scmp.ne.s32.totalorder %s2791_s14, 0 }
 0x136   : > { %s1406_s30 = sshll.u32 %s510_s19, 5 }
 0x137   : > { %s2558_s26 = scalar_lea.vmem [#allocation13], %s1406_s30 }
 0x138   : > { %1988 = dma.done.wait (%p2792_p4), %s500_s7, 512  }
 0x139   : > { %1990 = vsyncadd (%p2792_p4), %s500_s7, 4294966784  ;;  %s518_s20 = scalar_lea.sflag [#allocation15], %s481_s28  ;;  %s521_s25 = scalar_lea.vmem [#allocation14], %s1406_s30 }
 0x13a   : > { %1992 = dma.done.wait (%p2792_p4), %s518_s20, 1024  }
 0x13b   : > { %1994 = vsyncadd (%p2792_p4), %s518_s20, 4294966272  ;;  %s1409_s23 = sshll.u32 %s510_s19, 3  ;;  %s2568_s11 = scalar_lea.vmem [#allocation16], %s1406_s30 }
 0x13c   : > { %s536_s21 = scalar_lea.sflag [#allocation18], %s510_s19  ;;  %s2570_s8 = scalar_lea.vmem [#allocation17], %s1409_s23 }
 0x13d   : > { %1996 = dma.done.wait (%p2792_p4), %s536_s21, 128  }
 0x13e   : > { %1998 = vsyncadd (%p2792_p4), %s536_s21, 4294967168  ;;  %s606_s16 = scalar_lea.vmem [#allocation19], %s2535_s1  ;;  %s2793_s5 = sld [smem:[#allocation31_spill]] }
 0x144   : > { %p1411_p7 = scmp.ne.s32.totalorder %s2793_s5, 0 }
 0x145   : > { %vm611_vm0 = vcmask (!%p1411_p7), 261120   ;;  %v2057_v0 = vmov (!%p1411_p7), 0.0  }
 0x146   : > { %610 = sbr.rel (%p1411_p7) target bundleno = 333 (0x14d), region = 88  ;;  %612 = vst.msk [vmem:[#allocation2] sm:$0xff] (!%p1411_p7), %vm611_vm0, %v2057_v0 }
 0x14d PF: > { %v618_v1 = vld [vmem:[%s521_s25] sm:$0xff]  ;;  %v619_v2 = vld [vmem:[%s521_s25 + $0x8] sm:$0xff]  ;;  %v620_v3 = vld [vmem:[%s521_s25 + $0x10] sm:$0xff]  ;;  %v2058_v4 = vmov 0.0|0.0   ;;  %vm2059_vm1 = vmmov 0   ;;  %v2060_v7 = vmov 0.0  }
 0x14e   : > { %1498 = vmatprep.subr.bf16.mxu0 %v2058_v4  ;;  %v1499_v5 = vpack.c.bf16 %v619_v2, %v618_v1  ;;  %v621_v6 = vld [vmem:[%s521_s25 + $0x18] sm:$0xff]  ;;  %1458 = vmatprep.mubr.msk.f32.mxu0 %vm2059_vm1, %v2060_v7  ;;  %v697_v9 = vld [vmem:[%s2568_s11] sm:$0xff]  ;;  %v698_v10 = vld [vmem:[%s2568_s11 + $0x8] sm:$0xff]  ;;  %vm622_vm2 = vcmask 261120   ;;  %s2794_s12 = sld [smem:[#allocation31_spill]]  ;;  %vm776_vm3 = vcmask 64512  }
 0x14f   : > { %1504 = vmatprep.subr.bf16.mxu1 %v2058_v4  ;;  %1469 = vmatprep.mubr.msk.f32.mxu1 %vm2059_vm1, %v2060_v7  ;;  %v1502_v8 = vpack.c.bf16 %v621_v6, %v620_v3  ;;  %v781_v11 = vld [vmem:[%s2558_s26] sm:$0xff]  ;;  %v782_v12 = vld [vmem:[%s2558_s26 + $0x8] sm:$0xff]  ;;  %v1505_v13 = vpack.c.bf16 %v698_v10, %v697_v9  ;;  %v783_v16 = vld [vmem:[%s2558_s26 + $0x10] sm:$0xff] }
 0x150   : > { %1500 = vmatpush3.bf16.msra.mxu0 %v1499_v5  ;;  %v617_v14 = vld [vmem:[%s485_s15] sm:$0xff]  ;;  %v1511_v15 = vpack.c.bf16 %v782_v12, %v781_v11  ;;  %v780_v19 = vld [vmem:[%s476_s29] sm:$0xff]  ;;  %v1034_v43 = vld [vmem:[%s2570_s8] sm:$0xff] }
 0x151   : > { %1501 = vmatprep.subr.bf16.mxu0 %v2058_v4  ;;  %1506 = vmatpush3.bf16.msra.mxu1 %v1505_v13  ;;  %v784_v17 = vld [vmem:[%s2558_s26 + $0x18] sm:$0xff]  ;;  %v699_v20 = vld [vmem:[%s2568_s11 + $0x10] sm:$0xff]  ;;  %v1033_v55 = vld [vmem:[#allocation2] sm:$0xff] }
 0x152   : > { %1507 = vmatprep.subr.bf16.mxu1 %v2058_v4  ;;  %v1514_v18 = vpack.c.bf16 %v784_v17, %v783_v16  ;;  %v700_v21 = vld [vmem:[%s2568_s11 + $0x18] sm:$0xff]  ;;  %v696_v23 = vld [vmem:[%s494_s18] sm:$0xff] }
 0x153   : > { %v1508_v22 = vpack.c.bf16 %v700_v21, %v699_v20  ;;  %v864_v32 = vld [vmem:[%s2551_s13] sm:$0xf] }
 0x154   : > { %1503 = vmatpush3.bf16.msra.mxu0 %v1502_v8  ;;  %s1414_s28 = sshll.u32 %s2794_s12, 3  ;;  %v865_v33 = vunpack.c.l.bf16 %v864_v32  ;;  %p1421_p9 = scmp.ne.s32.totalorder %s2794_s12, 3 }
 0x155   : > { %1510 = vmatprep.subr.bf16.mxu0 %v2058_v4  ;;  %1509 = vmatpush3.bf16.msra.mxu1 %v1508_v22  ;;  %s775_s29 = scalar_lea.vmem [#allocation3], %s1414_s28  ;;  %s778_s27 = scalar_lea.vmem [#allocation4], %s1414_s28 }
 0x156   : > { %1483 = vmatprep.subr.mxu1 %v2060_v7 }
 0x157   : > { %1459 = vmatmul.mubr.msk.f32.vlgmr.msra.gmra.mrb[0].mxu0 %vm622_vm2, %v617_v14 }
 0x158   : > { %1512 = vmatpush3.bf16.msra.mxu0 %v1511_v15  ;;  %1480 = vmatprep.mubr.msk.f32.mxu0 %vm2059_vm1, %v2060_v7 }
 0x159   : > { %1513 = vmatprep.subr.bf16.mxu0 %v2058_v4  ;;  %1470 = vmatmul.mubr.msk.f32.vlgmr.msra.gmra.mrb[0].mxu1 %vm622_vm2, %v696_v23 }
 0x15a   : > { %1485 = vmatprep.mubr.msk.f32.mxu1 %vm2059_vm1, %v2060_v7 }
 0x15c   : > { %1515 = vmatpush3.bf16.msra.mxu0 %v1514_v18 }
 0x15d   : > { %1493 = vmatprep.subr.mxu0 %v2060_v7 }
 0x15f   : > { %1481 = vmatmul.mubr.msk.f32.vlgmr.msra.gmra.mrb[2].mxu0 %vm622_vm2, %v780_v19 }
 0x160   : > { %1495 = vmatprep.mubr.msk.f32.mxu0 %vm2059_vm1, %v2060_v7  ;;  %1494 = vmatpush3.msra.mxu0 %v1034_v43 }
 0x22a   : > { %v692_v24 = vpop.f32.mrb[0].mxu0 }
 0x22b   : > { %777 = vst.msk [vmem:[%s775_s29] sm:$0xff] %vm776_vm3, %v692_v24  ;;  %v1460_v25 = vpop.f32.mrb[1].mxu0 }
 0x22c   : > { %v770_v29 = vpop.f32.mrb[0].mxu1 }
 0x22d   : > { %779 = vst.msk [vmem:[%s778_s27] sm:$0xff] %vm776_vm3, %v770_v29  ;;  %v1471_v30 = vpop.f32.mrb[1].mxu1 }
 0x232   : > { %v861_v26 = vld [vmem:[%s775_s29] sm:$0xff]  ;;  %v855_v27 = vpop.f32.mrb[2].mxu0 }
 0x233   : > { %1484 = vmatpush3.xpose.msk.msra.mxu1 %vm776_vm3, %v861_v26  ;;  %v1482_v28 = vpop.f32.mrb[3].mxu0 }
 0x234   : > { %1488 = vmatprep.subr.mxu1 %v2060_v7  ;;  %v863_v31 = vld [vmem:[%s778_s27] sm:$0xff] }
 0x236   : > { %1486 = vmatmul.mubr.msk.f32.vlgmr.msra.gmra.mrb[2].mxu1 %vm776_vm3, %v855_v27 }
 0x237   : > { %1490 = vmatprep.mubr.msk.f32.mxu1 %vm2059_vm1, %v2060_v7  ;;  %1489 = vmatpush3.msra.mxu1 %v863_v31 }
 0x309   : > { %v939_v34 = vpop.f32.mrb[2].mxu1 }
 0x30a   : > { %v940_v35 = vadd.f32 %v939_v34, %v865_v33  ;;  %v1487_v36 = vpop.f32.mrb[3].mxu1 }
 0x30c   : > { %v943_v37 = vsel %vm776_vm3, %v940_v35, -inf }
 0x30d   : > { %944 = vmax.xlane.f32.xlu0 %v943_v37 }
 0x39a   : > { %v945_v38 = vpop.xlane.xlu0 %944 }
 0x39b   : > { %v946_v39 = vsub.f32 %v940_v35, %v945_v38 }
 0x39d   : > { %v947_v40 = vmul.f32 1.442695, %v946_v39 }
 0x39f   : > { %1659 = vpow2.f32 %v947_v40 }
 0x3a9   : > { %v1660_v41 = vpop.eup %1659 }
 0x3aa   : > { %1491 = vmatmul.mubr.msk.f32.vlgmr.msra.gmra.mrb[4].mxu1 %vm776_vm3, %v1660_v41  ;;  %v949_v42 = vsel %vm776_vm3, %v1660_v41, 0.0 }
 0x3ab   : > { %950 = vadd.xlane.f32.xlu0 %v949_v42 }
 0x438   : > { %v951_v44 = vpop.xlane.xlu0 %950 }
 0x439   : > { %1661 = vrcp.f32 %v951_v44 }
 0x443   : > { %v1662_v45 = vpop.eup %1661 }
 0x444   : > { %v953_v46 = vmul.f32 %v1662_v45, %v951_v44 }
 0x446   : > { %v954_v47 = vsub.f32 2.0, %v953_v46 }
 0x448   : > { %v955_v48 = vmul.f32 %v1662_v45, %v954_v47 }
 0x44a   : > { %v956_v49 = vmul.f32 %v955_v48, %v951_v44 }
 0x44c   : > { %v957_v50 = vsub.f32 2.0, %v956_v49 }
 0x44e   : > { %v958_v51 = vmul.f32 %v957_v50, %v955_v48 }
 0x47d   : > { %v1028_v52 = vpop.f32.mrb[4].mxu1 }
 0x47e   : > { %v1032_v53 = vmul.f32 %v1028_v52, %v958_v51  ;;  %v1492_v54 = vpop.f32.mrb[5].mxu1 }
 0x480   : > { %1496 = vmatmul.mubr.msk.f32.vlgmr.msra.gmra.mrb[4].mxu0 %vm776_vm3, %v1032_v53 }
 0x550   : > { %1113 = sbr.rel (%p1421_p9) target bundleno = 1375 (0x55f), region = 96 }
 0x553   : > { %v1104_v56 = vpop.f32.mrb[4].mxu0 }
 0x554   : > { %v1108_v57 = vadd.f32 %v1104_v56, %v1033_v55  ;;  %v1497_v58 = vpop.f32.mrb[5].mxu0 }
 0x556   : > { %1109 = vst.msk [vmem:[#allocation2] sm:$0xff] %vm622_vm2, %v1108_v57 }
 0x55d   : > { %v1114_v59 = vld [vmem:[#allocation2] sm:$0xff] }
 0x55e   : > { %1115 = vst.msk [vmem:[%s606_s16] sm:$0xff] %vm622_vm2, %v1114_v59 }
 0x55f PF: > { %s2795_s15 = sld [smem:[#allocation32_spill]]  ;;  %s2796_s3 = sld [smem:[#allocation39_spill]] }
 0x560   : > { %s2797_s22 = sld [smem:[#allocation49_spill]]  ;;  %s1131_s19 = sshll.u32 %s606_s16, 4  ;;  %s1132_s19 = int_to_ptr.vmem [resolvable:$true] %s1131_s19 }
 0x561   : > { %s1117_s30 = scalar_lea.sflag [#allocation7], %s2532_s24  ;;  %s1903_s26 = scalar_lea.vmem %s1132_s19, 128 }
 0x562   : > { %p1904_p12 = scmp.ne.s32.totalorder %s1132_s19, %s1903_s26  ;;  %s2061_s20 = smov [#allocation19]  }
 0x563   : > { %s1907_s25 = sshll.u32 %s2061_s20, 4  ;;  %s1908_s25 = int_to_ptr.vmem [resolvable:$false] %s1907_s25 }
 0x564   : > { %s1909_s23 = scalar_lea.vmem %s1908_s25, 256  ;;  %p1910_p8 = scmp.lt.s32.totalorder %s1132_s19, %s1908_s25 }
 0x565   : > { %s1423_s18 = sshll.u32 %s2795_s15, 7  ;;  %p2798_p3 = scmp.ne.s32.totalorder %s2796_s3, 0 }
 0x566   : > { %s2621_s14 = scalar_lea.hbm %s2797_s22, %s1423_s18  ;;  %p1911_p5 = scmp.lt.s32.totalorder %s1909_s23, %s1903_s26 }
 0x567   : > { %p1905_p11 = pnand %p1904_p12, %p2798_p3 }
 0x568   : > { %p1912_p6 = por %p1911_p5, %p1910_p8 }
 0x569   : > { %p1906_p1 = pneg %p1905_p11 }
 0x56b   : > { %p1913_p10 = pnand %p1912_p6, %p1906_p1 }
 0x56d   : > { %1916 = shalt.err (!%p1913_p10)
}
 0x56e   : > { %s1917_s24 = scalar_lea.hbm %s2621_s14, 128  ;;  %s1921_s21 = scalar_lea.hbm %s2797_s22, 256 }
 0x56f   : > { %p1918_p13 = scmp.ne.s32.totalorder %s2621_s14, %s1917_s24  ;;  %p1922_p4 = scmp.lt.u32.totalorder %s2621_s14, %s2797_s22 }
 0x570   : > { %p1923_p7 = scmp.lt.u32.totalorder %s1921_s21, %s1917_s24  ;;  %p1925_p12 = scmp.lt.u32.totalorder %s1917_s24, %s2621_s14 }
 0x571   : > { %p1919_p0 = pnand %p1918_p13, %p2798_p3 }
 0x572   : > { %p1924_p9 = por %p1923_p7, %p1922_p4 }
 0x573   : > { %p1920_p2 = pneg %p1919_p0 }
 0x574   : > { %p1926_p11 = por %p1925_p12, %p1924_p9 }
 0x576   : > { %p1927_p1 = pnand %p1926_p11, %p1920_p2 }
 0x578   : > { %1930 = shalt.err (!%p1927_p1)
}
 0x579   : > { %1532 = dma.vmem_to_hbm [thread:$0]  (%p2798_p3), %s1132_s19, 128, %s2621_s14, %s1117_s30  }
 0x57a PF: > { %s2799_s5 = sld [smem:[#allocation35_spill]]  ;;  %s2800_s12 = sld [smem:[#allocation29_spill]] }
 0x57b   : > { %s2801_s28 = sld [smem:[#allocation40_spill]] }
 0x580   : > { %p1564_p8 = scmp.ge.s32.totalorder %s2799_s5, 2  ;;  %s1143_s29 = sand.u32 1, %s2800_s12  }
 0x581   : > { %p2802_p5 = scmp.ne.s32.totalorder %s2801_s28, 0  ;;  %s1144_s27 = scalar_lea.sflag [#allocation7], %s1143_s29 }
 0x583   : > { %p1560_p6 = pnand %p1564_p8, %p2802_p5 }
 0x585   : > { %2000 = dma.done.wait (!%p1560_p6), %s1144_s27, 128  }
 0x586   : > { %2002 = vsyncadd (!%p1560_p6), %s1144_s27, 4294967168  ;;  %s36_s15 = sadd.s32 1, %s2799_s5   ;;  %s2803_s27 = sld [smem:[#allocation27_spill]] }
 0x587   : > { %p33_p10 = scmp.ge.s32.totalorder %s36_s15, 10   ;;  %s2804_s28 = sld [smem:[#allocation28_spill]] }
 0x588   : > { %s2805_s29 = sld [smem:[#allocation44_spill]]  ;;  %s2806_s30 = sld [smem:[#allocation30_spill]] }
 0x589   : > { %s2807_s3 = smov %s2373_s9  ;;  %s2808_s11 = sld [smem:[#allocation33_spill]] }
 0x58a   : > { %s2809_s12 = sld [smem:[#allocation34_spill]]  ;;  %s2810_s13 = sld [smem:[#allocation42_spill]] }
 0x58b   : > { %s2811_s14 = sld [smem:[#allocation43_spill]]  ;;  %s2812_s9 = smov %s2025_s10 }
 0x58c   : > { %s2813_s10 = smov %s2807_s3  ;;  %35 = sbr.rel (!%p33_p10) target bundleno = 23 (0x17), region = 198 }
 0x593   :  { %1149 = vsyncpa [#allocation6], 1 }
 0x594   :  { %1151 = vsyncpa [#allocation6 + $0x1], 1 }
 0x595   :  { %1152 = vsyncpa [#allocation9], 1 }
 0x596   :  { %1154 = vsyncpa [#allocation9 + $0x1], 1 }
 0x597   :  { %1155 = vsyncpa [#allocation12], 1 }
 0x598   :  { %1157 = vsyncpa [#allocation12 + $0x1], 1 }
 0x599   :  { %1158 = vsyncpa [#allocation15], 1 }
 0x59a   :  { %1160 = vsyncpa [#allocation15 + $0x1], 1 }
 0x59b   :  { %1161 = vsyncpa [#allocation18], 1 }
 0x59c   :  { %1163 = vsyncpa [#allocation18 + $0x1], 1 }
 0x59d   :  { %1164 = vsyncpa [#allocation7], 1 }
 0x59e   :  { %1166 = vsyncpa [#allocation7 + $0x1], 1 }

</bundles_post_ra>
